<compile_context>
chip_gen: v6e
topology: v6e:2x2x1
jax: 0.10.0
libtpu: 0.0.40
codegen_flags: <defaults>
</compile_context>

<pallas_src>
import functools

import jax
import jax.numpy as jnp
from jax import lax
from jax.experimental import pallas as pl
from jax.experimental.pallas import tpu as pltpu

LANE = 128
SUBLANE = 8


def _hinge_partial_kernel(x_ref, y_ref, o_ref, *, margin, total_n, row_tile,
                          needs_mask):
    # Upcast inside the kernel (DMA streams the native dtype).
    xv = x_ref[...].astype(jnp.float32)
    yv = y_ref[...].astype(jnp.float32)

    # Elementwise hinge on the VPU.
    v = jnp.maximum(jnp.float32(margin) - xv + yv, jnp.float32(0.0))

    if needs_mask:
        # Ragged tail / out-of-bounds rows of the last block contribute 0.
        i = pl.program_id(0)
        base = i * (row_tile * LANE)
        ridx = lax.broadcasted_iota(jnp.int32, (row_tile, LANE), 0)
        lidx = lax.broadcasted_iota(jnp.int32, (row_tile, LANE), 1)
        gidx = base + ridx * LANE + lidx
        v = jnp.where(gidx < total_n, v, jnp.float32(0.0))

    # Fold the tile into a single (8, 128) vreg: pure VPU adds, no XLU,
    # no carried accumulator -> the grid axis stays fully parallel.
    partial = v.reshape(row_tile // SUBLANE, SUBLANE, LANE).sum(axis=0)
    o_ref[...] = partial[None]  # (1, 8, 128) lane-dense store


def hinge_loss(x, y, margin: float = 2.0, row_tile: int = 1024):
    """Pallas TPU implementation of HingeLoss.forward. Returns a scalar f32."""
    assert x.shape == y.shape, "x and y must have the same shape"
    total_n = int(x.size)

    xf = x.reshape(-1)
    yf = y.reshape(-1)

    # Pad (with zeros) only up to a multiple of one (8, 128) vreg so the flat
    # array reshapes to (rows, 128) with rows % 8 == 0. Padded / OOB elements
    # are zeroed by the in-kernel mask, never by sentinel values.
    chunk = SUBLANE * LANE  # 1024 elements
    padded_n = ((total_n + chunk - 1) // chunk) * chunk
    pad = padded_n - total_n
    if pad > 0:
        xf = jnp.pad(xf, (0, pad))
        yf = jnp.pad(yf, (0, pad))

    rows = padded_n // LANE              # multiple of 8
    row_tile = min(int(row_tile), rows)  # single block for tiny inputs
    row_tile = max(SUBLANE, (row_tile // SUBLANE) * SUBLANE)

    x2 = xf.reshape(rows, LANE)
    y2 = yf.reshape(rows, LANE)

    grid_len = -(-rows // row_tile)  # ceil-div; last block may be partial
    needs_mask = (pad > 0) or (rows % row_tile != 0)

    kernel = functools.partial(
        _hinge_partial_kernel,
        margin=float(margin),
        total_n=total_n,
        row_tile=row_tile,
        needs_mask=needs_mask,
    )

    partials = pl.pallas_call(
        kernel,
        out_shape=jax.ShapeDtypeStruct((grid_len, SUBLANE, LANE), jnp.float32),
        grid_spec=pltpu.PrefetchScalarGridSpec(
            num_scalar_prefetch=0,
            grid=(grid_len,),
            in_specs=[
                pl.BlockSpec((row_tile, LANE), lambda i: (i, 0)),
                pl.BlockSpec((row_tile, LANE), lambda i: (i, 0)),
            ],
            out_specs=pl.BlockSpec((1, SUBLANE, LANE), lambda i: (i, 0, 0)),
        ),
        compiler_params=pltpu.CompilerParams(
            # No carried state: every block writes its own partial, so the
            # axis can shard across TensorCores (v7x megacore).
            dimension_semantics=("parallel",),
        ),
    )(x2, y2)

    # Tiny final reduction (grid_len * 1024 f32) + mean normalization in JAX.
    return jnp.sum(partials) / jnp.float32(total_n)


if __name__ == "__main__":
    key = jax.random.PRNGKey(0)
    kx, ky = jax.random.split(key)

    # Small shapes consistent with a conv-knrm style score tensor.
    shape = (2, 4, 16, 16)
    x = jax.random.normal(kx, shape, dtype=jnp.float32)
    y = jax.random.normal(ky, shape, dtype=jnp.float32)

    loss = hinge_loss(x, y, margin=2.0)
    loss = jax.block_until_ready(loss)

    # Reference check (plain JAX, same semantics as the PyTorch module).
    ref = jnp.mean(jnp.maximum(2.0 - x + y, 0.0))
    assert jnp.allclose(loss, ref, atol=1e-5, rtol=1e-5), (loss, ref)

    print("KERNEL_OK")
</pallas_src>

<mosaic_0001>
module attributes {stable_mosaic.version = 11 : i64} {
  func.func @_hinge_partial_kernel(%arg0: i32, %arg1: memref<16x128xf32, #tpu.memory_space<vmem>>, %arg2: memref<16x128xf32, #tpu.memory_space<vmem>>, %arg3: memref<1x8x128xf32, #tpu.memory_space<vmem>>) attributes {dimension_semantics = [#tpu.dimension_semantics<parallel>], iteration_bounds = array<i64: 1>, scalar_prefetch = 0 : i64, scratch_operands = 0 : i64, tpu.core_type = #tpu.core_type<tc>, window_params = [{transform_indices = @transform_0, window_bounds = array<i64: 16, 128>}, {transform_indices = @transform_1, window_bounds = array<i64: 16, 128>}, {transform_indices = @transform_2, window_bounds = array<i64: 1, 8, 128>}]} {
    %c0 = arith.constant 0 : index
    %c0_0 = arith.constant 0 : index
    %0 = vector.load %arg1[%c0, %c0_0] : memref<16x128xf32, #tpu.memory_space<vmem>>, vector<16x128xf32>
    %c0_1 = arith.constant 0 : index
    %c0_2 = arith.constant 0 : index
    %1 = vector.load %arg2[%c0_1, %c0_2] : memref<16x128xf32, #tpu.memory_space<vmem>>, vector<16x128xf32>
    %cst = arith.constant 2.000000e+00 : f32
    %2 = vector.broadcast %cst : f32 to vector<16x128xf32>
    %3 = arith.subf %2, %0 : vector<16x128xf32>
    %4 = arith.addf %3, %1 : vector<16x128xf32>
    %cst_3 = arith.constant 0.000000e+00 : f32
    %5 = vector.broadcast %cst_3 : f32 to vector<16x128xf32>
    %6 = arith.maximumf %4, %5 : vector<16x128xf32>
    %7 = vector.shape_cast %6 : vector<16x128xf32> to vector<2x8x128xf32>
    %cst_4 = arith.constant dense<0.000000e+00> : vector<8x128xf32>
    %8 = vector.multi_reduction <add>, %7, %cst_4 [0] : vector<2x8x128xf32> to vector<8x128xf32>
    %9 = vector.shape_cast %8 : vector<8x128xf32> to vector<1x8x128xf32>
    %c0_5 = arith.constant 0 : index
    %c0_6 = arith.constant 0 : index
    %c0_7 = arith.constant 0 : index
    %10 = vector.load %arg3[%c0_5, %c0_6, %c0_7] : memref<1x8x128xf32, #tpu.memory_space<vmem>>, vector<1x8x128xf32>
    tpu.vector_store %arg3[%c0_5, %c0_6, %c0_7], %9 {strides = array<i32>} : memref<1x8x128xf32, #tpu.memory_space<vmem>>, vector<1x8x128xf32>,
    return
  }
  func.func @transform_0(%arg0: i32) -> (i32, i32) {
    %c0_i32 = arith.constant 0 : i32
    %c0_i32_0 = arith.constant 0 : i32
    return %arg0, %c0_i32 : i32, i32
  }
  func.func @transform_1(%arg0: i32) -> (i32, i32) {
    %c0_i32 = arith.constant 0 : i32
    %c0_i32_0 = arith.constant 0 : i32
    return %arg0, %c0_i32 : i32, i32
  }
  func.func @transform_2(%arg0: i32) -> (i32, i32, i32) {
    %c0_i32 = arith.constant 0 : i32
    %c0_i32_0 = arith.constant 0 : i32
    %c0_i32_1 = arith.constant 0 : i32
    return %arg0, %c0_i32, %c0_i32_0 : i32, i32, i32
  }
}

</mosaic_0001>

<bundles_post_ra>
// kernel: tpu_custom_call.1
= control target key start
LH: loop header
LB: loop body
LE: loop exit
PB: predicated region body
PF: predicated region fallthrough
CT: control target
= control target key end

     0   :  { %7 = vsyncpa [#allocation3], 0  ;;  %s168_s0 = inlined_call_operand.hbm [shape: f32[16,128], index: 0, kind: input, shape index: {}]   ;;  %s169_s1 = inlined_call_operand.hbm [shape: f32[16,128], index: 1, kind: input, shape index: {}]   ;;  %s170_s2 = inlined_call_operand.hbm [shape: f32[1,8,128], index: 2, kind: output, shape index: {}]  }
   0x1   :  { %8 = vsyncpa [#allocation6], 0 }
   0x2   :  { %9 = vsyncpa [#allocation4], 0  ;;  %s139_s9 = smov [#allocation2]  }
   0x3   :  { %s15_s10 = sshll.u32 %s139_s9, 4  ;;  %s16_s10 = int_to_ptr.vmem [resolvable:$true] %s15_s10 }
   0x4   :  { %s81_s11 = scalar_lea.vmem %s16_s10, 256  ;;  %p86_p1 = scmp.lt.s32.totalorder %s16_s10, %s16_s10 }
   0x5   :  { %p82_p0 = scmp.ne.s32.totalorder %s16_s10, %s81_s11  ;;  %p87_p2 = scmp.lt.s32.totalorder %s81_s11, %s81_s11 }
   0x7   :  { %p88_p3 = por %p87_p2, %p86_p1 }
   0x9   :  { %p89_p4 = pnand %p88_p3, %p82_p0 }
   0xb   :  { %92 = shalt.err (!%p89_p4)
}
   0xc   :  { %s140_s12 = smov 128   ;;  %s141_s13 = smov 8  }
   0xd   :  { %21 = dma.hbm_to_vmem [thread:$0]  %s168_s0, 256, %s16_s10, [#allocation3], %s140_s12, %s140_s12, %s141_s13  }
   0xe   :  { %s142_s16 = smov [#allocation5]  }
   0xf   :  { %s27_s17 = sshll.u32 %s142_s16, 4  ;;  %s28_s17 = int_to_ptr.vmem [resolvable:$true] %s27_s17 }
  0x10   :  { %s101_s18 = scalar_lea.vmem %s28_s17, 256  ;;  %p106_p6 = scmp.lt.s32.totalorder %s28_s17, %s28_s17 }
  0x11   :  { %p102_p5 = scmp.ne.s32.totalorder %s28_s17, %s101_s18  ;;  %p107_p7 = scmp.lt.s32.totalorder %s101_s18, %s101_s18 }
  0x13   :  { %p108_p8 = por %p107_p7, %p106_p6 }
  0x15   :  { %p109_p9 = pnand %p108_p8, %p102_p5 }
  0x17   :  { %112 = shalt.err (!%p109_p9)
}
  0x18   :  { %33 = dma.hbm_to_vmem [thread:$0]  %s169_s1, 256, %s28_s17, [#allocation6], %s140_s12, %s140_s12, %s141_s13  }
  0x19   :  { %133 = dma.done.wait [#allocation3], 256  }
  0x1a   :  { %134 = vsyncadd [#allocation3], 4294967040 }
  0x1b   :  { %135 = dma.done.wait [#allocation6], 256  }
  0x1c   :  { %136 = vsyncadd [#allocation6], 4294967040  ;;  %v40_v0 = vld [vmem:[#allocation2] sm:$0xff]  ;;  %v41_v1 = vld [vmem:[#allocation2 + $0x8] sm:$0xff]  ;;  %s143_s0 = smov [#allocation7]  }
  0x1d   :  { %v42_v2 = vld [vmem:[#allocation5] sm:$0xff]  ;;  %v43_v3 = vld [vmem:[#allocation5 + $0x8] sm:$0xff]  ;;  %v44_v4 = vsub.f32 2.0, %v40_v0  ;;  %v45_v5 = vsub.f32 2.0, %v41_v1  ;;  %s58_s21 = sshll.u32 %s143_s0, 4  ;;  %s59_s21 = int_to_ptr.vmem [resolvable:$true] %s58_s21 }
  0x1e   :  { %s113_s1 = scalar_lea.vmem %s59_s21, 128  ;;  %p118_p11 = scmp.lt.s32.totalorder %s59_s21, %s59_s21 }
  0x1f   :  { %v46_v6 = vadd.f32 %v44_v4, %v42_v2  ;;  %v47_v7 = vadd.f32 %v45_v5, %v43_v3  ;;  %p114_p10 = scmp.ne.s32.totalorder %s59_s21, %s113_s1  ;;  %p119_p12 = scmp.lt.s32.totalorder %s113_s1, %s113_s1 }
  0x21   :  { %v48_v8 = vmax.f32 %v46_v6, 0.0  ;;  %v49_v9 = vmax.f32 %v47_v7, 0.0  ;;  %p120_p13 = por %p119_p12, %p118_p11 }
  0x23   :  { %v50_v10 = vadd.f32 %v49_v9, %v48_v8  ;;  %p121_p0 = pnand %p120_p13, %p114_p10 }
  0x25   :  { %51 = vst [vmem:[#allocation7] sm:$0xff] %v50_v10 }
  0x26   :  { %124 = shalt.err (!%p121_p0)
}
  0x27   :  { %61 = dma.vmem_to_hbm [thread:$0]  %s59_s21, 128, %s170_s2, [#allocation4]  }
  0x28   :  { %137 = dma.done.wait [#allocation4], 128  }
  0x29   :  { %138 = vsyncadd [#allocation4], 4294967168 }
  0x2a   :  { %65 = vsyncpa [#allocation3], 1 }
  0x2b   :  { %66 = vsyncpa [#allocation6], 1 }
  0x2c   :  { %67 = vsyncpa [#allocation4], 1 }

</bundles_post_ra>
